<compile_context>
chip_gen: v6e
topology: v6e:2x2x1
jax: 0.10.0
libtpu: 0.0.40
codegen_flags: <defaults>
</compile_context>

<pallas_src>
import functools

import jax
import jax.numpy as jnp
from jax.experimental import pallas as pl
from jax.experimental.pallas import tpu as pltpu


def _round_up(n, m):
    return ((n + m - 1) // m) * m


def _bf16_eup_supported():
    """bf16 tanh path only pays off on chips with a bf16 EUP (v6e / v7x)."""
    try:
        kind = jax.devices()[0].device_kind.lower()
    except Exception:
        return True
    return not any(g in kind for g in ("v2", "v3", "v4", "v5"))


def _value_kernel(xt_ref, w1_ref, b1_ref, w2_ref, b2_ref, w3_ref, b3_ref,
                  out_ref, *, bf16_tanh):
    cd = w1_ref.dtype                                  # bf16 (MXU-native)
    xt = xt_ref[...].astype(cd)                        # (S, tm): in-kernel cast

    # fc1 + tanh : (H, S) @ (S, tm) -> (H, tm), f32 accumulation
    h = jnp.dot(w1_ref[...], xt, preferred_element_type=jnp.float32) + b1_ref[...]
    h = jnp.tanh(h.astype(cd)) if bf16_tanh else jnp.tanh(h).astype(cd)

    # fc2 + tanh : (H, H) @ (H, tm) -> (H, tm)
    h = jnp.dot(w2_ref[...], h, preferred_element_type=jnp.float32) + b2_ref[...]
    h = jnp.tanh(h.astype(cd)) if bf16_tanh else jnp.tanh(h).astype(cd)

    # fc3 : (V, H) @ (H, tm) -> (V, tm)   (lane-dense output, no transpose needed)
    v = jnp.dot(w3_ref[...], h, preferred_element_type=jnp.float32) + b3_ref[...]
    out_ref[...] = v.astype(out_ref.dtype)


@functools.partial(jax.jit, static_argnames=("block_rows", "bf16_tanh"))
def value_forward(x, params, *, block_rows=4096, bf16_tanh=None):
    """Critic forward pass.  x: (B, state_space) f32 -> (B, var) f32."""
    if bf16_tanh is None:
        bf16_tanh = _bf16_eup_supported()

    w1, b1 = params["w1"], params["b1"]
    w2, b2 = params["w2"], params["b2"]
    w3, b3 = params["w3"], params["b3"]

    B, S = x.shape
    H = w1.shape[0]
    V = w3.shape[0]

    cd = jnp.bfloat16
    # No-ops when params are already pre-cast (see init_value_params).
    w1c, w2c, w3c = w1.astype(cd), w2.astype(cd), w3.astype(cd)
    b1f, b2f, b3f = (b.astype(jnp.float32) for b in (b1, b2, b3))

    # Batch on the lane axis (tiny transpose; x stays f32, cast in kernel).
    xt = x.T                                                   # (S, B)

    # Batch tiling: one block for small B; otherwise >= 2 blocks (v7x megacore)
    # with tm a multiple of 128 (lane alignment).  Last block may overhang B.
    if B <= 256:
        tm, nb = B, 1
    else:
        tm = min(_round_up(block_rows, 128), _round_up(pl.cdiv(B, 2), 128))
        nb = pl.cdiv(B, tm)
    P = nb * tm

    cost = pl.CostEstimate(
        flops=2 * P * (S * H + H * H + H * V),
        transcendentals=2 * P * H,                     # two tanh layers
        bytes_accessed=(B * S * 4 + P * V * 4
                        + (S * H + H * H + H * V) * 2
                        + (2 * H + V) * 4),
    )

    out_t = pl.pallas_call(
        functools.partial(_value_kernel, bf16_tanh=bool(bf16_tanh)),
        out_shape=jax.ShapeDtypeStruct((V, P), jnp.float32),
        grid_spec=pltpu.PrefetchScalarGridSpec(
            num_scalar_prefetch=0,
            grid=(nb,),
            in_specs=[
                pl.BlockSpec((S, tm), lambda i: (0, i)),   # x^T: tiled over batch lanes
                pl.BlockSpec((H, S), lambda i: (0, 0)),    # w1: resident
                pl.BlockSpec((H, 1), lambda i: (0, 0)),    # b1
                pl.BlockSpec((H, H), lambda i: (0, 0)),    # w2
                pl.BlockSpec((H, 1), lambda i: (0, 0)),    # b2
                pl.BlockSpec((V, H), lambda i: (0, 0)),    # w3
                pl.BlockSpec((V, 1), lambda i: (0, 0)),    # b3
            ],
            out_specs=pl.BlockSpec((V, tm), lambda i: (0, i)),  # lane-dense output
        ),
        compiler_params=pltpu.CompilerParams(
            dimension_semantics=("parallel",),          # both TCs on v7x
        ),
        cost_estimate=cost,
    )(xt, w1c, b1f, w2c, b2f, w3c, b3f)

    # (V, P) -> (B, V); trivial when V == 1, slice is a no-op when P == B.
    return out_t[:, :B].T


def init_value_params(key, state_space, hidden=64, var=1,
                      weight_dtype=jnp.bfloat16):
    """Matches torch.nn.init.normal_(weight) (std=1) and zeros_(bias).
    Weights are kept in PyTorch (out_features, in_features) layout, pre-cast to
    `weight_dtype` (bf16 = MXU-native) so no per-call converts precede the
    kernel; biases are (out_features, 1) float32 (column vectors for the
    feature-major kernel layout)."""
    k1, k2, k3 = jax.random.split(key, 3)
    return {
        "w1": jax.random.normal(k1, (hidden, state_space), jnp.float32).astype(weight_dtype),
        "b1": jnp.zeros((hidden, 1), jnp.float32),
        "w2": jax.random.normal(k2, (hidden, hidden), jnp.float32).astype(weight_dtype),
        "b2": jnp.zeros((hidden, 1), jnp.float32),
        "w3": jax.random.normal(k3, (var, hidden), jnp.float32).astype(weight_dtype),
        "b3": jnp.zeros((var, 1), jnp.float32),
    }


def _reference(x, params, bf16_tanh):
    """Pure-JAX reference mirroring the kernel's dtype path."""
    cd = jnp.bfloat16
    xt = x.T.astype(cd)
    w1, w2, w3 = (params[k].astype(cd) for k in ("w1", "w2", "w3"))
    b1, b2, b3 = (params[k].astype(jnp.float32) for k in ("b1", "b2", "b3"))
    h = jnp.dot(w1, xt, preferred_element_type=jnp.float32) + b1
    h = jnp.tanh(h.astype(cd)) if bf16_tanh else jnp.tanh(h).astype(cd)
    h = jnp.dot(w2, h, preferred_element_type=jnp.float32) + b2
    h = jnp.tanh(h.astype(cd)) if bf16_tanh else jnp.tanh(h).astype(cd)
    return (jnp.dot(w3, h, preferred_element_type=jnp.float32) + b3).T


def _assert_close(out, ref, tol=3e-2):
    # Scale-relative check: tolerant of bf16 / EUP-vs-XLA tanh rounding
    # differences, but catches any layout / weight / tiling bug (O(scale)).
    scale = float(jnp.maximum(jnp.max(jnp.abs(ref)), 1.0))
    max_err = float(jnp.max(jnp.abs(out - ref)))
    assert max_err <= tol * scale, (max_err, scale)


if __name__ == "__main__":
    key = jax.random.PRNGKey(0)
    kx, kp, kx2 = jax.random.split(key, 3)

    batch, state_space, hidden, var = 2, 8, 64, 1
    params = init_value_params(kp, state_space, hidden, var)
    bf16_tanh = _bf16_eup_supported()

    # Small-batch path: single block, grid=(1,).
    x = jax.random.normal(kx, (batch, state_space), jnp.float32)
    out = jax.block_until_ready(value_forward(x, params))
    assert out.shape == (batch, var)
    assert bool(jnp.all(jnp.isfinite(out)))
    _assert_close(out, _reference(x, params, bf16_tanh))

    # Tiled path: non-multiple batch -> two blocks, last block overhangs.
    x_big = jax.random.normal(kx2, (1037, state_space), jnp.float32)
    out_big = jax.block_until_ready(value_forward(x_big, params))
    assert out_big.shape == (1037, var)
    assert bool(jnp.all(jnp.isfinite(out_big)))
    _assert_close(out_big, _reference(x_big, params, bf16_tanh))

    print("KERNEL_OK")
</pallas_src>

<mosaic_0001>
module attributes {stable_mosaic.version = 11 : i64} {
  func.func @_value_kernel(%arg0: i32, %arg1: memref<8x2xf32, #tpu.memory_space<vmem>>, %arg2: memref<64x8xbf16, #tpu.memory_space<vmem>>, %arg3: memref<64x1xf32, #tpu.memory_space<vmem>>, %arg4: memref<64x64xbf16, #tpu.memory_space<vmem>>, %arg5: memref<64x1xf32, #tpu.memory_space<vmem>>, %arg6: memref<1x64xbf16, #tpu.memory_space<vmem>>, %arg7: memref<1x1xf32, #tpu.memory_space<vmem>>, %arg8: memref<1x2xf32, #tpu.memory_space<vmem>>) attributes {dimension_semantics = [#tpu.dimension_semantics<parallel>], iteration_bounds = array<i64: 1>, scalar_prefetch = 0 : i64, scratch_operands = 0 : i64, tpu.core_type = #tpu.core_type<tc>, window_params = [{transform_indices = @transform_0, window_bounds = array<i64: 8, 2>}, {pipeline_mode = #tpu.pipeline_mode<synchronous>, transform_indices = @transform_1, window_bounds = array<i64: 64, 8>}, {pipeline_mode = #tpu.pipeline_mode<synchronous>, transform_indices = @transform_2, window_bounds = array<i64: 64, 1>}, {pipeline_mode = #tpu.pipeline_mode<synchronous>, transform_indices = @transform_3, window_bounds = array<i64: 64, 64>}, {pipeline_mode = #tpu.pipeline_mode<synchronous>, transform_indices = @transform_4, window_bounds = array<i64: 64, 1>}, {pipeline_mode = #tpu.pipeline_mode<synchronous>, transform_indices = @transform_5, window_bounds = array<i64: 1, 64>}, {pipeline_mode = #tpu.pipeline_mode<synchronous>, transform_indices = @transform_6, window_bounds = array<i64: 1, 1>}, {transform_indices = @transform_7, window_bounds = array<i64: 1, 2>}]} {
    %c0 = arith.constant 0 : index
    %c0_0 = arith.constant 0 : index
    %0 = vector.load %arg1[%c0, %c0_0] : memref<8x2xf32, #tpu.memory_space<vmem>>, vector<8x2xf32>
    %1 = arith.truncf %0 : vector<8x2xf32> to vector<8x2xbf16>
    %c0_1 = arith.constant 0 : index
    %c0_2 = arith.constant 0 : index
    %2 = vector.load %arg2[%c0_1, %c0_2] : memref<64x8xbf16, #tpu.memory_space<vmem>>, vector<64x8xbf16>
    %cst = arith.constant dense<0.000000e+00> : vector<64x2xf32>
    %3 = tpu.matmul %2, %1, %cst {dimension_numbers = #tpu.dot_dimension_numbers<[1], [0], [0], [1], [0, 0, 1, 1], [], []>} : vector<64x8xbf16>, vector<8x2xbf16>, vector<64x2xf32> -> vector<64x2xf32>
    %c0_3 = arith.constant 0 : index
    %c0_4 = arith.constant 0 : index
    %4 = vector.load %arg3[%c0_3, %c0_4] : memref<64x1xf32, #tpu.memory_space<vmem>>, vector<64x1xf32>
    %5 = vector.broadcast %4 : vector<64x1xf32> to vector<64x2xf32>
    %6 = arith.addf %3, %5 : vector<64x2xf32>
    %7 = arith.truncf %6 : vector<64x2xf32> to vector<64x2xbf16>
    %8 = math.tanh %7 : vector<64x2xbf16>
    %c0_5 = arith.constant 0 : index
    %c0_6 = arith.constant 0 : index
    %9 = vector.load %arg4[%c0_5, %c0_6] : memref<64x64xbf16, #tpu.memory_space<vmem>>, vector<64x64xbf16>
    %cst_7 = arith.constant dense<0.000000e+00> : vector<64x2xf32>
    %10 = tpu.matmul %9, %8, %cst_7 {dimension_numbers = #tpu.dot_dimension_numbers<[1], [0], [0], [1], [0, 0, 1, 1], [], []>} : vector<64x64xbf16>, vector<64x2xbf16>, vector<64x2xf32> -> vector<64x2xf32>
    %c0_8 = arith.constant 0 : index
    %c0_9 = arith.constant 0 : index
    %11 = vector.load %arg5[%c0_8, %c0_9] : memref<64x1xf32, #tpu.memory_space<vmem>>, vector<64x1xf32>
    %12 = vector.broadcast %11 : vector<64x1xf32> to vector<64x2xf32>
    %13 = arith.addf %10, %12 : vector<64x2xf32>
    %14 = arith.truncf %13 : vector<64x2xf32> to vector<64x2xbf16>
    %15 = math.tanh %14 : vector<64x2xbf16>
    %c0_10 = arith.constant 0 : index
    %c0_11 = arith.constant 0 : index
    %16 = vector.load %arg6[%c0_10, %c0_11] : memref<1x64xbf16, #tpu.memory_space<vmem>>, vector<1x64xbf16>
    %cst_12 = arith.constant dense<0.000000e+00> : vector<1x2xf32>
    %17 = tpu.matmul %16, %15, %cst_12 {dimension_numbers = #tpu.dot_dimension_numbers<[1], [0], [0], [1], [0, 0, 1, 1], [], []>} : vector<1x64xbf16>, vector<64x2xbf16>, vector<1x2xf32> -> vector<1x2xf32>
    %c0_13 = arith.constant 0 : index
    %c0_14 = arith.constant 0 : index
    %18 = vector.load %arg7[%c0_13, %c0_14] : memref<1x1xf32, #tpu.memory_space<vmem>>, vector<1x1xf32>
    %19 = vector.broadcast %18 : vector<1x1xf32> to vector<1x2xf32>
    %20 = arith.addf %17, %19 : vector<1x2xf32>
    %c0_15 = arith.constant 0 : index
    %c0_16 = arith.constant 0 : index
    %21 = vector.load %arg8[%c0_15, %c0_16] : memref<1x2xf32, #tpu.memory_space<vmem>>, vector<1x2xf32>
    tpu.vector_store %arg8[%c0_15, %c0_16], %20 {strides = array<i32>} : memref<1x2xf32, #tpu.memory_space<vmem>>, vector<1x2xf32>,
    return
  }
  func.func @transform_0(%arg0: i32) -> (i32, i32) {
    %c0_i32 = arith.constant 0 : i32
    %c0_i32_0 = arith.constant 0 : i32
    return %c0_i32, %arg0 : i32, i32
  }
  func.func @transform_1(%arg0: i32) -> (i32, i32) {
    %c0_i32 = arith.constant 0 : i32
    %c0_i32_0 = arith.constant 0 : i32
    %c0_i32_1 = arith.constant 0 : i32
    return %c0_i32, %c0_i32_0 : i32, i32
  }
  func.func @transform_2(%arg0: i32) -> (i32, i32) {
    %c0_i32 = arith.constant 0 : i32
    %c0_i32_0 = arith.constant 0 : i32
    %c0_i32_1 = arith.constant 0 : i32
    return %c0_i32, %c0_i32_0 : i32, i32
  }
  func.func @transform_3(%arg0: i32) -> (i32, i32) {
    %c0_i32 = arith.constant 0 : i32
    %c0_i32_0 = arith.constant 0 : i32
    %c0_i32_1 = arith.constant 0 : i32
    return %c0_i32, %c0_i32_0 : i32, i32
  }
  func.func @transform_4(%arg0: i32) -> (i32, i32) {
    %c0_i32 = arith.constant 0 : i32
    %c0_i32_0 = arith.constant 0 : i32
    %c0_i32_1 = arith.constant 0 : i32
    return %c0_i32, %c0_i32_0 : i32, i32
  }
  func.func @transform_5(%arg0: i32) -> (i32, i32) {
    %c0_i32 = arith.constant 0 : i32
    %c0_i32_0 = arith.constant 0 : i32
    %c0_i32_1 = arith.constant 0 : i32
    return %c0_i32, %c0_i32_0 : i32, i32
  }
  func.func @transform_6(%arg0: i32) -> (i32, i32) {
    %c0_i32 = arith.constant 0 : i32
    %c0_i32_0 = arith.constant 0 : i32
    %c0_i32_1 = arith.constant 0 : i32
    return %c0_i32, %c0_i32_0 : i32, i32
  }
  func.func @transform_7(%arg0: i32) -> (i32, i32) {
    %c0_i32 = arith.constant 0 : i32
    %c0_i32_0 = arith.constant 0 : i32
    return %c0_i32, %arg0 : i32, i32
  }
}

</mosaic_0001>

<bundles_post_ra>
// kernel: value_forward.1
= control target key start
LH: loop header
LB: loop body
LE: loop exit
PB: predicated region body
PF: predicated region fallthrough
CT: control target
= control target key end

     0   :  { %s693_s0 = inlined_call_operand.vmem [shape: f32[8,2], index: 0, kind: input, shape index: {}]   ;;  %s694_s1 = inlined_call_operand.vmem [shape: bf16[64,8], index: 1, kind: input, shape index: {}]   ;;  %s695_s2 = inlined_call_operand.vmem [shape: f32[64,1], index: 2, kind: input, shape index: {}]   ;;  %s696_s3 = inlined_call_operand.vmem [shape: bf16[64,64], index: 3, kind: input, shape index: {}]   ;;  %s697_s4 = inlined_call_operand.vmem [shape: f32[64,1], index: 4, kind: input, shape index: {}]   ;;  %s698_s5 = inlined_call_operand.vmem [shape: bf16[1,64], index: 5, kind: input, shape index: {}]   ;;  %s699_s6 = inlined_call_operand.<no memory space> [shape: f32[1,1], index: 6, kind: input, shape index: {}]   ;;  %s700_s7 = inlined_call_operand.hbm [shape: f32[1,2], index: 7, kind: output, shape index: {}]  }
   0x1   :  { %v12_v0 = vstv %s699_s6 }
   0x2   :  { %13 = vst [vmem:[#allocation2] sm:$0x1] %v12_v0 }
   0x3   :  { %v30_v1 = vld [vmem:[%s693_s0] sm:$0xff]  ;;  %vm121_vm0 = vcmask 1043456   ;;  %vm108_vm1 = vcmask 64512   ;;  %v511_v5 = vld [vmem:[%s694_s1 + $0x8] sm:$0xff]   ;;  %v512_v6 = vld [vmem:[%s694_s1 + $0x10] sm:$0xff]   ;;  %v556_v7 = vmov 0  }
   0x4   :  { %v31_v2 = vpack.c.bf16 %v30_v1, %v30_v1  ;;  %v510_v3 = vld [vmem:[%s694_s1] sm:$0xff]   ;;  %508 = vset.pattern.permute.xlu0 %v556_v7  ;;  %v46_v8 = vld [vmem:[%s695_s2 + $0x30] sm:$0xff]  ;;  %509 = vset.pattern.permute.xlu1 %v556_v7  ;;  %v47_v10 = vld [vmem:[%s695_s2 + $0x38] sm:$0xff] }
   0x5   :  { %467 = vmatprep.mubr.msk.bf16.mxu0 %vm108_vm1, %v510_v3  ;;  %80 = vperm.xlu0 %508, %v46_v8   ;;  %v44_v9 = vld [vmem:[%s695_s2 + $0x20] sm:$0xff]  ;;  %v45_v11 = vld [vmem:[%s695_s2 + $0x28] sm:$0xff]  ;;  %v513_v12 = vld [vmem:[%s694_s1 + $0x18] sm:$0xff]  }
   0x6   :  { %503 = vmatprep.subr.msk.bf16.mxu0 %vm121_vm0, %v31_v2  ;;  %v123_v4 = vsel %vm121_vm0, %v31_v2, 0  ;;  %70 = vperm.xlu1 %509, %v44_v9   ;;  %v42_v13 = vld [vmem:[%s695_s2 + $0x10] sm:$0xff]  ;;  %v43_v14 = vld [vmem:[%s695_s2 + $0x18] sm:$0xff] }
   0x7   :  { %466 = vmatpush3.bf16.msra.mxu0 %v123_v4 }
   0x9   :  { %85 = vperm.xlu0 %508, %v47_v10  }
   0xa   :  { %468 = vmatmul.mubr.msk.bf16.vlgmr.msra.gmra.mxu0 %vm108_vm1, %v511_v5  ;;  %75 = vperm.xlu1 %509, %v45_v11  }
   0xb   :  { %471 = vmatprep.mubr.msk.bf16.mxu0 %vm108_vm1, %v512_v6 }
   0xc   :  { %14 = vsyncpa [#allocation4], 0  ;;  %v40_v15 = vld [vmem:[%s695_s2] sm:$0xff]  ;;  %v41_v16 = vld [vmem:[%s695_s2 + $0x8] sm:$0xff]  ;;  %vm274_vm2 = vcmask 523264   ;;  %v557_v62 = vmov 0.0  }
   0xd   :  { %60 = vperm.xlu0 %508, %v42_v13   ;;  %v212_v17 = vld [vmem:[%s697_s4 + $0x30] sm:$0xff]  ;;  %v213_v18 = vld [vmem:[%s697_s4 + $0x38] sm:$0xff]  ;;  %v210_v19 = vld [vmem:[%s697_s4 + $0x20] sm:$0xff]  ;;  %491 = vmatprep.subr.bf16.mxu0 %v557_v62  ;;  %vm558_vm3 = vmmov 0   ;;  %s559_s24 = smov [#allocation3]   ;;  %vm414_vm4 = vcmask 8192  }
   0xe   :  { %65 = vperm.xlu1 %509, %v43_v14   ;;  %v211_v20 = vld [vmem:[%s697_s4 + $0x28] sm:$0xff]  ;;  %v208_v21 = vld [vmem:[%s697_s4 + $0x10] sm:$0xff]  ;;  %v209_v22 = vld [vmem:[%s697_s4 + $0x18] sm:$0xff]  ;;  %s422_s1 = sshll.u32 %s559_s24, 4  ;;  %s423_s1 = int_to_ptr.vmem [resolvable:$true] %s422_s1 }
   0xf   :  { %v206_v23 = vld [vmem:[%s697_s4] sm:$0xff]  ;;  %v207_v24 = vld [vmem:[%s697_s4 + $0x8] sm:$0xff]  ;;  %v516_v60 = vld [vmem:[%s696_s3 + $0x10] sm:$0xff]   ;;  %s534_s25 = scalar_lea.vmem %s423_s1, 16  ;;  %s538_s26 = scalar_lea.vmem %s423_s1, 32 }
  0x10   :  { %v361_v25 = vld [vmem:[#allocation2] sm:$0x1]  ;;  %v515_v59 = vld [vmem:[%s696_s3 + $0x8] sm:$0xff]   ;;  %v517_v61 = vld [vmem:[%s696_s3 + $0x18] sm:$0xff]   ;;  %p535_p0 = scmp.ne.s32.totalorder %s423_s1, %s534_s25  ;;  %p539_p1 = scmp.lt.s32.totalorder %s423_s1, %s423_s1 }
  0x11   :  { %50 = vperm.xlu0 %508, %v40_v15   ;;  %v514_v26 = vld [vmem:[%s696_s3] sm:$0xff]   ;;  %p540_p2 = scmp.lt.s32.totalorder %s538_s26, %s534_s25 }
  0x12   :  { %472 = vmatmul.mubr.msk.bf16.gmra.mxu0 %vm108_vm1, %v513_v12  ;;  %55 = vperm.xlu1 %509, %v41_v16  }
  0x13   :  { %483 = vmatprep.mubr.msk.bf16.mxu1 %vm274_vm2, %v514_v26  ;;  %499 = vmatprep.mubr.msk.bf16.mxu0 %vm558_vm3, %v557_v62  ;;  %p541_p3 = por %p540_p2, %p539_p1 }
  0x15   :  { %246 = vperm.xlu0 %508, %v212_v17   ;;  %p542_p4 = pnand %p541_p3, %p535_p0 }
  0x16   :  { %251 = vperm.xlu1 %509, %v213_v18  }
  0x19   :  { %236 = vperm.xlu0 %508, %v210_v19  }
  0x1a   :  { %241 = vperm.xlu1 %509, %v211_v20  }
  0x1d   :  { %226 = vperm.xlu0 %508, %v208_v21  }
  0x1e   :  { %231 = vperm.xlu1 %509, %v209_v22  }
  0x21   :  { %216 = vperm.xlu0 %508, %v206_v23  }
  0x22   :  { %221 = vperm.xlu1 %509, %v207_v24  }
  0x25   :  { %364 = vperm.xlu0 %508, %v361_v25  }
  0x80   :  { %v81_v29 = vpop.permute.xlu0 %80 }
  0x81   :  { %v71_v27 = vpop.permute.xlu1 %70 }
  0x84   :  { %v86_v34 = vpop.permute.xlu0 %85 }
  0x85   :  { %v76_v32 = vpop.permute.xlu1 %75 }
  0x88   :  { %v61_v41 = vpop.permute.xlu0 %60 }
  0x89   :  { %v66_v37 = vpop.permute.xlu1 %65 }
  0x8c   :  { %v51_v52 = vpop.permute.xlu0 %50 }
  0x8d   :  { %v56_v49 = vpop.permute.xlu1 %55 }
  0x90   :  { %v247_v2 = vpop.permute.xlu0 %246 }
  0x91   :  { %v252_v0 = vpop.permute.xlu1 %251 }
  0x94   :  { %v237_v7 = vpop.permute.xlu0 %236 }
  0x95   :  { %v242_v5 = vpop.permute.xlu1 %241 }
  0x98   :  { %v227_v17 = vpop.permute.xlu0 %226 }
  0x99   :  { %v232_v12 = vpop.permute.xlu1 %231 }
  0x9c   :  { %v217_v24 = vpop.permute.xlu0 %216 }
  0x9d   :  { %v222_v21 = vpop.permute.xlu1 %221 }
  0xca   :  { %v469_v28 = vpop.f32.mrf.mxu0 }
  0xcb   :  { %v168_v47 = vadd.f32 %v469_v28, %v61_v41 }
  0xcc   :  { %v159_v30 = vpop.f32.mrf.mxu0 }
  0xcd   :  { %v160_v53 = vadd.f32 %v159_v30, %v51_v52 }
  0xce   :  { %v470_v31 = vpop.f32.mrf.mxu0 }
  0xcf   :  { %v171_v43 = vadd.f32 %v470_v31, %v66_v37  ;;  %v360_v31 = vld [vmem:[%s698_s5] sm:$0x1] }
  0xd0   :  { %v162_v33 = vpop.f32.mrf.mxu0 }
  0xd1   :  { %v191_v50 = vpack.c.bf16 %v171_v43, %v168_v47  ;;  %v163_v51 = vadd.f32 %v162_v33, %v56_v49 }
  0xd2   :  { %v473_v35 = vpop.f32.mrf.mxu0 }
  0xd3   :  { %v184_v39 = vadd.f32 %v473_v35, %v81_v29  ;;  %v190_v54 = vpack.c.bf16 %v163_v51, %v160_v53  ;;  %v365_v35 = vpop.permute.xlu0 %364 }
  0xd4   :  { %v175_v36 = vpop.f32.mrf.mxu0 }
  0xd5   :  { %v176_v44 = vadd.f32 %v175_v36, %v71_v27 }
  0xd6   :  { %v474_v38 = vpop.f32.mrf.mxu0 }
  0xd7   :  { %v187_v40 = vadd.f32 %v474_v38, %v86_v34 }
  0xd8   :  { %v178_v42 = vpop.f32.mrf.mxu0 }
  0xd9   :  { %v193_v45 = vpack.c.bf16 %v187_v40, %v184_v39  ;;  %v179_v46 = vadd.f32 %v178_v42, %v76_v32  ;;  %v367_v32 = vlaneseq }
  0xdb   :  { %518 = vtanh.bf16 %v193_v45  ;;  %v192_v48 = vpack.c.bf16 %v179_v46, %v176_v44  ;;  %v368_v33 = vshrl.u32 %v367_v32, 7 }
  0xdd   :  { %520 = vtanh.bf16 %v192_v48  ;;  %v369_v34 = vsub.s32 0, %v368_v33 }
  0xde   :  { %522 = vtanh.bf16 %v191_v50 }
  0xdf   :  { %524 = vtanh.bf16 %v190_v54  ;;  %v370_v36 = vrot.slane %v365_v35, %v369_v34 }
  0xe9   :  { %v519_v55 = vpop.eup %518 }
  0xea   :  { %475 = vmatprep.subr.bf16.mxu1 %v519_v55 }
  0xeb   :  { %v521_v56 = vpop.eup %520  ;;  %476 = vmatpush3.bf16.msra.mxu1 %v519_v55 }
  0xec   :  { %477 = vmatprep.subr.bf16.mxu1 %v521_v56  ;;  %v523_v57 = vpop.eup %522 }
  0xed   :  { %v525_v58 = vpop.eup %524 }
  0xef   :  { %478 = vmatpush3.bf16.msra.mxu1 %v521_v56 }
  0xf0   :  { %479 = vmatprep.subr.bf16.mxu1 %v523_v57 }
  0xf3   :  { %480 = vmatpush3.bf16.msra.mxu1 %v523_v57 }
  0xf4   :  { %481 = vmatprep.subr.bf16.mxu1 %v525_v58 }
  0xf7   :  { %482 = vmatpush3.bf16.msra.mxu1 %v525_v58 }
  0xfa   :  { %484 = vmatmul.mubr.msk.bf16.vlgmr.msra.gmra.mxu1 %vm274_vm2, %v515_v59 }
  0xfb   :  { %487 = vmatprep.mubr.msk.bf16.mxu1 %vm274_vm2, %v516_v60 }
 0x102   :  { %488 = vmatmul.mubr.msk.bf16.gmra.mxu1 %vm274_vm2, %v517_v61 }
 0x1ba   :  { %v485_v63 = vpop.f32.mrf.mxu1 }
 0x1bb   :  { %v330_v20 = vadd.f32 %v485_v63, %v227_v17 }
 0x1bc   :  { %v321_v1 = vpop.f32.mrf.mxu1 }
 0x1bd   :  { %v322_v25 = vadd.f32 %v321_v1, %v217_v24 }
 0x1be   :  { %v486_v3 = vpop.f32.mrf.mxu1 }
 0x1bf   :  { %v333_v18 = vadd.f32 %v486_v3, %v232_v12 }
 0x1c0   :  { %v324_v4 = vpop.f32.mrf.mxu1 }
 0x1c1   :  { %v353_v22 = vpack.c.bf16 %v333_v18, %v330_v20  ;;  %v325_v23 = vadd.f32 %v324_v4, %v222_v21 }
 0x1c2   :  { %v489_v6 = vpop.f32.mrf.mxu1 }
 0x1c3   :  { %v346_v10 = vadd.f32 %v489_v6, %v247_v2  ;;  %v352_v26 = vpack.c.bf16 %v325_v23, %v322_v25 }
 0x1c4   :  { %v337_v8 = vpop.f32.mrf.mxu1 }
 0x1c5   :  { %v338_v14 = vadd.f32 %v337_v8, %v237_v7 }
 0x1c6   :  { %v490_v9 = vpop.f32.mrf.mxu1 }
 0x1c7   :  { %v349_v11 = vadd.f32 %v490_v9, %v252_v0 }
 0x1c8   :  { %v340_v13 = vpop.f32.mrf.mxu1 }
 0x1c9   :  { %v355_v15 = vpack.c.bf16 %v349_v11, %v346_v10  ;;  %v341_v16 = vadd.f32 %v340_v13, %v242_v5 }
 0x1cb   :  { %526 = vtanh.bf16 %v355_v15  ;;  %v354_v19 = vpack.c.bf16 %v341_v16, %v338_v14 }
 0x1cd   :  { %528 = vtanh.bf16 %v354_v19 }
 0x1ce   :  { %530 = vtanh.bf16 %v353_v22 }
 0x1cf   :  { %532 = vtanh.bf16 %v352_v26 }
 0x1d9   :  { %v527_v27 = vpop.eup %526 }
 0x1da   :  { %492 = vmatpush3.bf16.msra.mxu0 %v527_v27 }
 0x1db   :  { %493 = vmatprep.subr.bf16.mxu0 %v557_v62  ;;  %v529_v28 = vpop.eup %528 }
 0x1dc   :  { %v531_v29 = vpop.eup %530 }
 0x1dd   :  { %v533_v30 = vpop.eup %532 }
 0x1de   :  { %494 = vmatpush3.bf16.msra.mxu0 %v529_v28 }
 0x1df   :  { %495 = vmatprep.subr.bf16.mxu0 %v557_v62 }
 0x1e2   :  { %496 = vmatpush3.bf16.msra.mxu0 %v531_v29 }
 0x1e3   :  { %497 = vmatprep.subr.bf16.mxu0 %v557_v62 }
 0x1e6   :  { %498 = vmatpush3.bf16.msra.mxu0 %v533_v30 }
 0x1e9   :  { %500 = vmatmul.mubr.msk.bf16.vlgmr.msra.gmra.mxu0 %vm274_vm2, %v360_v31 }
 0x2a9   :  { %v408_v37 = vpop.f32.mrf.mxu0 }
 0x2aa   :  { %v409_v38 = vadd.f32 %v408_v37, %v370_v36 }
 0x2ab   :  { %v501_v39 = vpop.f32.mrf.mxu0 }
 0x2ac   :  { %415 = vst.msk [vmem:[#allocation3] sm:$0x1] %vm414_vm4, %v409_v38 }
 0x2ad   :  { %v411_v40 = vpop.f32.mrf.mxu0 }
 0x2ae   :  { %545 = shalt.err (!%p542_p4)
}
 0x2af   :  { %425 = dma.vmem_to_hbm [thread:$0]  %s423_s1, 16, %s700_s7, [#allocation4]   ;;  %v502_v41 = vpop.f32.mrf.mxu0 }
 0x2b0   :  { %554 = dma.done.wait [#allocation4], 16  }
 0x2b1   :  { %555 = vsyncadd [#allocation4], 4294967280 }
 0x2b2   :  { %429 = vsyncpa [#allocation4], 1 }

</bundles_post_ra>
